<compile_context>
chip_gen: v7x
topology: tpu7x:2x2x1
jax: 0.10.0
libtpu: 0.0.40
codegen_flags: <defaults>
</compile_context>

<pallas_src>
import numpy as np
import jax
import jax.numpy as jnp
from jax.experimental import pallas as pl

# ---- hyper-parameters (small, chosen so flatten gives exactly 32 features,
# ---- matching nn.Linear(32, nb_classes) in the reference module) ----
NB_CLASSES = 4
CHANS = 8           # Chans
SAMPLES = 16        # Samples
KERN_LENGTH = 7     # kernLength (must be odd)
F1 = 8
D = 2
F2 = F1 * D         # 16
K3 = 15             # separable depthwise kernel size
PAD3 = 7
POOL = 4
BATCH = 2
EPS = 1e-5
SUBLANE = 8         # pad batch rows to the sublane tile

L2 = SAMPLES - CHANS + 1            # length after conv2 (valid conv) = 9
L3 = (L2 - POOL) // POOL + 1        # length after AvgPool1d(4) = 2
assert KERN_LENGTH % 2 == 1
assert F2 * L3 == 32, "flattened features must match nn.Linear(32, nb_classes)"

N0 = CHANS * SAMPLES                # 128 flattened input features
N1 = F1 * SAMPLES                   # 128
N2 = F2 * L2                        # 144
N3 = F2 * L3                        # 32


# ----------------------------- Pallas kernel ------------------------------
def eegnet_kernel(x_ref, w1_ref, w2_ref, w3_ref, out_ref):
    # Homogeneous-coordinate matmuls: the last activation column is 1 and the
    # last weight row holds the folded bias, so each stage is a single MXU dot.
    # conv1+bn1+conv2+bn2 (folded) + relu
    h = jnp.maximum(
        jnp.dot(x_ref[...], w1_ref[...], preferred_element_type=jnp.float32),
        0.0)
    # avgpool(4) + depthwise + 1x1 + bn3 (folded) + relu
    h = jnp.maximum(
        jnp.dot(h.astype(jnp.bfloat16), w2_ref[...],
                preferred_element_type=jnp.float32),
        0.0)
    # flatten (already flat, channel-major) + fc  -> (Bp, NB_CLASSES)
    out_ref[...] = jnp.dot(h.astype(jnp.bfloat16), w3_ref[...],
                           preferred_element_type=jnp.float32)


# ------------------------- weight preprocessing (host, numpy) --------------
def densify_grouped(W, groups):
    """(C_out, C_in/groups, K) grouped conv weight -> dense (C_out, C_in, K)."""
    C_out, C_in_g, K = W.shape
    if groups == 1:
        return W
    C_in = C_in_g * groups
    out_per_group = C_out // groups
    Wd = np.zeros((C_out, C_in, K), np.float64)
    for o in range(C_out):
        g = o // out_per_group
        Wd[o, g * C_in_g:(g + 1) * C_in_g, :] = W[o]
    return Wd


def conv1d_matrix(Wd, L_in, pad):
    """Dense conv weight (C_out, C_in, K) -> block-Toeplitz matrix M of shape
    (C_in*L_in, C_out*L_out) so that, for a row-major flattened NCL activation
    row x_flat, y_flat = x_flat @ M is the zero-padded 1-D convolution."""
    C_out, C_in, K = Wd.shape
    L_out = L_in + 2 * pad - K + 1
    M = np.zeros((C_in, L_in, C_out, L_out), np.float64)
    for t in range(L_out):
        for k in range(K):
            j = t + k - pad
            if 0 <= j < L_in:
                M[:, j, :, t] += Wd[:, :, k].T
    return M.reshape(C_in * L_in, C_out * L_out)


def init_params(key):
    ks = jax.random.split(key, 24)

    def rn(k, shape, scale=0.1):
        return scale * jax.random.normal(k, shape, jnp.float32)

    p = {
        "W1": rn(ks[0], (F1, CHANS, KERN_LENGTH)), "b1": rn(ks[1], (F1,)),
        "g1": 1.0 + rn(ks[2], (F1,)), "beta1": rn(ks[3], (F1,)),
        "m1": rn(ks[4], (F1,)),
        "v1": 1.0 + 0.1 * jnp.abs(jax.random.normal(ks[5], (F1,), jnp.float32)),

        "W2": rn(ks[6], (F2, 1, CHANS)), "b2": rn(ks[7], (F2,)),
        "g2": 1.0 + rn(ks[8], (F2,)), "beta2": rn(ks[9], (F2,)),
        "m2": rn(ks[10], (F2,)),
        "v2": 1.0 + 0.1 * jnp.abs(jax.random.normal(ks[11], (F2,), jnp.float32)),

        "W3d": rn(ks[12], (F2, 1, K3)), "b3d": rn(ks[13], (F2,)),
        "W3p": rn(ks[14], (F2, F2, 1)), "b3p": rn(ks[15], (F2,)),
        "g3": 1.0 + rn(ks[16], (F2,)), "beta3": rn(ks[17], (F2,)),
        "m3": rn(ks[18], (F2,)),
        "v3": 1.0 + 0.1 * jnp.abs(jax.random.normal(ks[19], (F2,), jnp.float32)),

        "Wfc": rn(ks[20], (NB_CLASSES, F2 * L3)), "bfc": rn(ks[21], (NB_CLASSES,)),
    }
    return p


def prepare_constants(params):
    """Fold conv weights, biases, eval-mode BatchNorm affines, padding,
    pooling, flatten and fc into 3 bias-augmented bf16 matrices (host-side,
    done ONCE and cached)."""
    p = {k: np.asarray(v, np.float64) for k, v in params.items()}

    # --- layer 1: conv1 ('same' padding folded into the matrix) + bn1 ---
    s1 = p["g1"] / np.sqrt(p["v1"] + EPS)
    t1 = s1 * (p["b1"] - p["m1"]) + p["beta1"]
    A1 = conv1d_matrix(p["W1"], SAMPLES, KERN_LENGTH // 2)        # (N0, N1)
    A1 = A1 * np.repeat(s1, SAMPLES)[None, :]
    c1 = np.repeat(t1, SAMPLES)                                   # (N1,)

    # --- layer 2: grouped conv2 (densified) + bn2 ---
    s2 = p["g2"] / np.sqrt(p["v2"] + EPS)
    t2 = s2 * (p["b2"] - p["m2"]) + p["beta2"]
    A2 = conv1d_matrix(densify_grouped(p["W2"], F1), SAMPLES, 0)  # (N1, N2)
    A2 = A2 * np.repeat(s2, L2)[None, :]
    c2 = np.repeat(t2, L2)                                        # (N2,)

    # --- exact fold of layers 1+2 (no nonlinearity in between) ---
    A12 = A1 @ A2                                                 # (N0, N2)
    c12 = c1 @ A2 + c2                                            # (N2,)

    # --- layer 3: AvgPool1d(4) @ depthwise(15, pad 7) @ pointwise + bn3 ---
    pool_t = ((np.arange(L2)[:, None] // POOL)
              == np.arange(L3)[None, :]).astype(np.float64) / POOL   # (L2, L3)
    P = np.kron(np.eye(F2), pool_t)                               # (N2, N3)
    s3 = p["g3"] / np.sqrt(p["v3"] + EPS)
    tb3 = p["beta3"] - s3 * p["m3"]
    A3d = conv1d_matrix(densify_grouped(p["W3d"], F2), L3, PAD3)  # (N3, N3)
    A3p = conv1d_matrix(p["W3p"], L3, 0)                          # (N3, N3)
    s3r = np.repeat(s3, L3)
    A3p_s = A3p * s3r[None, :]
    A3 = P @ A3d @ A3p_s                                          # (N2, N3)
    c3 = (np.repeat(p["b3d"], L3) @ A3p_s
          + np.repeat(p["b3p"], L3) * s3r
          + np.repeat(tb3, L3))                                   # (N3,)

    # --- layer 4: flatten (channel-major, matches torch.flatten) + fc ---
    A4 = p["Wfc"].T                                               # (N3, NB_CLASSES)
    c4 = p["bfc"]                                                 # (NB_CLASSES,)

    # --- homogeneous augmentation: bias row in last weight row, the ones
    # --- activation column is preserved by a 1 in the bottom-right corner ---
    W1a = np.zeros((N0 + 1, N2 + 1), np.float64)
    W1a[:N0, :N2] = A12
    W1a[N0, :N2] = c12
    W1a[N0, N2] = 1.0
    W2a = np.zeros((N2 + 1, N3 + 1), np.float64)
    W2a[:N2, :N3] = A3
    W2a[N2, :N3] = c3
    W2a[N2, N3] = 1.0
    W3a = np.zeros((N3 + 1, NB_CLASSES), np.float64)
    W3a[:N3, :] = A4
    W3a[N3, :] = c4

    return (jnp.asarray(W1a, jnp.bfloat16),
            jnp.asarray(W2a, jnp.bfloat16),
            jnp.asarray(W3a, jnp.bfloat16))


# ------------------------------ JAX wrapper -------------------------------
def make_eegnet_forward(params, batch):
    """Fold constants once, return a jitted forward closing over them."""
    consts = prepare_constants(params)
    b_pad = max(SUBLANE, ((batch + SUBLANE - 1) // SUBLANE) * SUBLANE)

    dot_dims = ((N0 + 1) * (N2 + 1) + (N2 + 1) * (N3 + 1)
                + (N3 + 1) * NB_CLASSES)
    flops = 2 * b_pad * dot_dims
    bytes_accessed = (b_pad * (N0 + 1) * 2          # x (bf16)
                      + dot_dims * 2                # weights (bf16)
                      + b_pad * NB_CLASSES * 4)     # output (f32)
    cost = pl.CostEstimate(flops=flops, transcendentals=0,
                           bytes_accessed=bytes_accessed)

    @jax.jit
    def forward(x):
        b = x.shape[0]
        xf = x.reshape(b, N0).astype(jnp.bfloat16)
        ones = jnp.ones((b, 1), jnp.bfloat16)
        x_aug = jnp.concatenate([xf, ones], axis=1)              # (B, N0+1)
        x_aug = jnp.pad(x_aug, ((0, b_pad - b), (0, 0)))         # sublane pad
        # Gridless pallas_call: whole (padded) batch in one invocation; all
        # operands are full VMEM blocks (~50 KiB resident).
        out = pl.pallas_call(
            eegnet_kernel,
            out_shape=jax.ShapeDtypeStruct((b_pad, NB_CLASSES), jnp.float32),
            cost_estimate=cost,
        )(x_aug, *consts)
        return out[:b]                                           # (B, NB_CLASSES)

    return forward


# --------------------------- numpy reference ------------------------------
def _conv1d_np(x, w, b, pad, groups):
    B, Cin, L = x.shape
    Cout, Cg, K = w.shape
    xp = np.pad(x, ((0, 0), (0, 0), (pad, pad)))
    Lo = L + 2 * pad - K + 1
    y = np.zeros((B, Cout, Lo), np.float64)
    go = Cout // groups
    for o in range(Cout):
        g = o // go
        for l in range(Lo):
            patch = xp[:, g * Cg:(g + 1) * Cg, l:l + K]
            y[:, o, l] = np.sum(patch * w[o][None], axis=(1, 2)) + b[o]
    return y


def _bn_np(x, g, beta, m, v):
    return (x - m[None, :, None]) / np.sqrt(v[None, :, None] + EPS) \
        * g[None, :, None] + beta[None, :, None]


def ref_forward(x, p):
    y1 = _conv1d_np(x, p["W1"], p["b1"], pad=KERN_LENGTH // 2, groups=1)
    y1 = _bn_np(y1, p["g1"], p["beta1"], p["m1"], p["v1"])
    y1 = _conv1d_np(y1, p["W2"], p["b2"], pad=0, groups=F1)
    y1 = np.maximum(_bn_np(y1, p["g2"], p["beta2"], p["m2"], p["v2"]), 0.0)
    Lo = (y1.shape[-1] - POOL) // POOL + 1
    y1p = np.zeros((y1.shape[0], F2, Lo), np.float64)
    for j in range(Lo):
        y1p[:, :, j] = y1[:, :, POOL * j:POOL * j + POOL].mean(-1)
    y2 = _conv1d_np(y1p, p["W3d"], p["b3d"], pad=PAD3, groups=F2)
    y2 = _conv1d_np(y2, p["W3p"], p["b3p"], pad=0, groups=1)
    y2 = np.maximum(_bn_np(y2, p["g3"], p["beta3"], p["m3"], p["v3"]), 0.0)
    flat = y2.reshape(y2.shape[0], -1)
    return flat @ p["Wfc"].T + p["bfc"][None, :]


# --------------------------------- main ------------------------------------
if __name__ == "__main__":
    key = jax.random.PRNGKey(0)
    kx, kp = jax.random.split(key)
    x = jax.random.normal(kx, (BATCH, CHANS, SAMPLES), jnp.float32)
    params = init_params(kp)

    forward = make_eegnet_forward(params, BATCH)   # constants folded ONCE here
    out = jax.block_until_ready(forward(x))

    ref = ref_forward(np.asarray(x, np.float64),
                      {k: np.asarray(v, np.float64) for k, v in params.items()})
    # bf16 weights/activations with f32 accumulation; tolerance budgets for it.
    np.testing.assert_allclose(np.asarray(out), ref, rtol=2e-2, atol=2e-2)
    print("KERNEL_OK")
</pallas_src>

<mosaic_0001>
module attributes {stable_mosaic.version = 11 : i64} {
  func.func @eegnet_kernel(%arg0: memref<8x129xbf16, #tpu.memory_space<vmem>>, %arg1: memref<129x145xbf16, #tpu.memory_space<vmem>>, %arg2: memref<145x33xbf16, #tpu.memory_space<vmem>>, %arg3: memref<33x4xbf16, #tpu.memory_space<vmem>>, %arg4: memref<8x4xf32, #tpu.memory_space<vmem>>) attributes {dimension_semantics = [], scalar_prefetch = 0 : i64, scratch_operands = 0 : i64, tpu.core_type = #tpu.core_type<tc>} {
    %c0 = arith.constant 0 : index
    %c0_0 = arith.constant 0 : index
    %0 = vector.load %arg0[%c0, %c0_0] : memref<8x129xbf16, #tpu.memory_space<vmem>>, vector<8x129xbf16>
    %c0_1 = arith.constant 0 : index
    %c0_2 = arith.constant 0 : index
    %1 = vector.load %arg1[%c0_1, %c0_2] : memref<129x145xbf16, #tpu.memory_space<vmem>>, vector<129x145xbf16>
    %cst = arith.constant dense<0.000000e+00> : vector<8x145xf32>
    %2 = tpu.matmul %0, %1, %cst {dimension_numbers = #tpu.dot_dimension_numbers<[1], [0], [0], [1], [0, 0, 1, 1], [], []>} : vector<8x129xbf16>, vector<129x145xbf16>, vector<8x145xf32> -> vector<8x145xf32>
    %cst_3 = arith.constant 0.000000e+00 : f32
    %3 = vector.broadcast %cst_3 : f32 to vector<8x145xf32>
    %4 = arith.maximumf %2, %3 : vector<8x145xf32>
    %5 = arith.truncf %4 : vector<8x145xf32> to vector<8x145xbf16>
    %c0_4 = arith.constant 0 : index
    %c0_5 = arith.constant 0 : index
    %6 = vector.load %arg2[%c0_4, %c0_5] : memref<145x33xbf16, #tpu.memory_space<vmem>>, vector<145x33xbf16>
    %cst_6 = arith.constant dense<0.000000e+00> : vector<8x33xf32>
    %7 = tpu.matmul %5, %6, %cst_6 {dimension_numbers = #tpu.dot_dimension_numbers<[1], [0], [0], [1], [0, 0, 1, 1], [], []>} : vector<8x145xbf16>, vector<145x33xbf16>, vector<8x33xf32> -> vector<8x33xf32>
    %cst_7 = arith.constant 0.000000e+00 : f32
    %8 = vector.broadcast %cst_7 : f32 to vector<8x33xf32>
    %9 = arith.maximumf %7, %8 : vector<8x33xf32>
    %10 = arith.truncf %9 : vector<8x33xf32> to vector<8x33xbf16>
    %c0_8 = arith.constant 0 : index
    %c0_9 = arith.constant 0 : index
    %11 = vector.load %arg3[%c0_8, %c0_9] : memref<33x4xbf16, #tpu.memory_space<vmem>>, vector<33x4xbf16>
    %cst_10 = arith.constant dense<0.000000e+00> : vector<8x4xf32>
    %12 = tpu.matmul %10, %11, %cst_10 {dimension_numbers = #tpu.dot_dimension_numbers<[1], [0], [0], [1], [0, 0, 1, 1], [], []>} : vector<8x33xbf16>, vector<33x4xbf16>, vector<8x4xf32> -> vector<8x4xf32>
    %c0_11 = arith.constant 0 : index
    %c0_12 = arith.constant 0 : index
    %13 = vector.load %arg4[%c0_11, %c0_12] : memref<8x4xf32, #tpu.memory_space<vmem>>, vector<8x4xf32>
    tpu.vector_store %arg4[%c0_11, %c0_12], %12 {strides = array<i32>} : memref<8x4xf32, #tpu.memory_space<vmem>>, vector<8x4xf32>,
    return
  }
}

</mosaic_0001>

<bundles_post_ra>
// kernel: forward.1
= control target key start
LH: loop header
LB: loop body
LE: loop exit
PB: predicated region body
PF: predicated region fallthrough
CT: control target
= control target key end

     0   :  { %9 = vsyncpa [#allocation3], 0  ;;  %s645_s0 = inlined_call_operand.vmem [shape: bf16[8,129], index: 0, kind: input, shape index: {}]   ;;  %s646_s1 = inlined_call_operand.hbm [shape: bf16[129,145], index: 1, kind: input, shape index: {}]   ;;  %s647_s2 = inlined_call_operand.hbm [shape: bf16[145,33], index: 2, kind: input, shape index: {}]   ;;  %s648_s3 = inlined_call_operand.vmem [shape: bf16[33,4], index: 3, kind: input, shape index: {}]   ;;  %s649_s4 = inlined_call_operand.vmem [shape: f32[8,4], index: 4, kind: output, shape index: {}]  }
   0x1   :  { %10 = vsyncpa [#allocation5], 0  ;;  %s561_s15 = smov [#allocation2]   ;;  %s513_s19 = scalar_lea.hbm %s646_s1, 2176 }
   0x2   :  { %s18_s16 = sshll.u32 %s561_s15, 4  ;;  %p514_p0 = scmp.ne.s32.totalorder %s646_s1, %s513_s19  ;;  %s19_s16 = int_to_ptr.vmem [resolvable:$true] %s18_s16 }
   0x3   :  { %p517_p1 = scmp.lt.u32.totalorder %s513_s19, %s646_s1 }
   0x5   :  { %p519_p2 = pnand %p517_p1, %p514_p0 }
   0x7   :  { %522 = shalt.err (!%p519_p2)
}
   0x8   :  { %s523_s24 = scalar_lea.vmem %s19_s16, 2176  ;;  %p528_p4 = scmp.lt.s32.totalorder %s19_s16, %s19_s16 }
   0x9   :  { %p524_p3 = scmp.ne.s32.totalorder %s19_s16, %s523_s24  ;;  %p529_p5 = scmp.lt.s32.totalorder %s523_s24, %s523_s24 }
   0xb   :  { %p530_p6 = por %p529_p5, %p528_p4 }
   0xd   :  { %p531_p7 = pnand %p530_p6, %p524_p3 }
   0xf   :  { %534 = shalt.err (!%p531_p7)
}
  0x10   :  { %s562_s25 = smov 128   ;;  %s563_s26 = smov 8  }
  0x11   :  { %24 = dma.hbm_to_vmem [thread:$0]  %s646_s1, 2176, %s19_s16, [#allocation3], %s562_s25, %s562_s25, %s563_s26  }
  0x12   :  { %s564_s29 = smov [#allocation4]   ;;  %s535_s7 = scalar_lea.hbm %s647_s2, 1216 }
  0x13   :  { %s30_s30 = sshll.u32 %s564_s29, 4  ;;  %p536_p8 = scmp.ne.s32.totalorder %s647_s2, %s535_s7  ;;  %s31_s30 = int_to_ptr.vmem [resolvable:$true] %s30_s30 }
  0x14   :  { %p539_p9 = scmp.lt.u32.totalorder %s535_s7, %s647_s2 }
  0x16   :  { %p541_p10 = pnand %p539_p9, %p536_p8 }
  0x18   :  { %544 = shalt.err (!%p541_p10)
}
  0x19   :  { %s545_s12 = scalar_lea.vmem %s31_s30, 1216  ;;  %p550_p12 = scmp.lt.s32.totalorder %s31_s30, %s31_s30 }
  0x1a   :  { %p546_p11 = scmp.ne.s32.totalorder %s31_s30, %s545_s12  ;;  %p551_p13 = scmp.lt.s32.totalorder %s545_s12, %s545_s12 }
  0x1c   :  { %p552_p0 = por %p551_p13, %p550_p12 }
  0x1e   :  { %p553_p1 = pnand %p552_p0, %p546_p11 }
  0x20   :  { %556 = shalt.err (!%p553_p1)
}
  0x21   :  { %s565_s1 = smov 64   ;;  %s566_s13 = smov 4  }
  0x22   :  { %36 = dma.hbm_to_vmem [thread:$0]  %s647_s2, 1216, %s31_s30, [#allocation5], %s565_s1, %s565_s1, %s566_s13  }
  0x23   :  { %557 = dma.done.wait [#allocation3], 2176  }
  0x24   :  { %558 = vsyncadd [#allocation3], 4294965120 }
  0x25   :  { %559 = dma.done.wait [#allocation5], 1216  }
  0x26   :  { %560 = vsyncadd [#allocation5], 4294966080  ;;  %v567_v0 = vmov 0   ;;  %v472_v1 = vld [vmem:[#allocation2 + $0x4] ss:$8 sps:$4 sm:$0xff]   ;;  %vm155_vm0 = vcmask 7168  }
  0x27   :  { %296 = vmatprep.subr.bf16.mxu1 %v567_v0  ;;  %v474_v2 = vld [vmem:[#allocation2] ss:$8 sps:$4 sm:$0xff]   ;;  %168 = vmatprep.subr.bf16.mxu0 %v472_v1  ;;  %v475_v3 = vld [vmem:[#allocation2 + $0x14] ss:$8 sps:$4 sm:$0xff]   ;;  %v477_v4 = vld [vmem:[#allocation2 + $0x10] ss:$8 sps:$4 sm:$0xff]  }
  0x28   :  { %169 = vmatpush1.bf16.msra.mxu0 %v474_v2  ;;  %v478_v5 = vld [vmem:[#allocation2 + $0x24] ss:$8 sps:$4 sm:$0xff]   ;;  %v480_v6 = vld [vmem:[#allocation2 + $0x20] ss:$8 sps:$4 sm:$0xff]   ;;  %v481_v7 = vld [vmem:[#allocation2 + $0x34] ss:$8 sps:$4 sm:$0xff]  }
  0x29   :  { %170 = vmatprep.subr.bf16.mxu0 %v475_v3  ;;  %v483_v8 = vld [vmem:[#allocation2 + $0x30] ss:$8 sps:$4 sm:$0xff]   ;;  %v484_v9 = vld [vmem:[#allocation2 + $0x44] ss:$8 sps:$4 sm:$0xff]   ;;  %v486_v14 = vld [vmem:[#allocation2 + $0x40] ss:$8 sps:$4 sm:$0xff]  }
  0x2a   :  { %v46_v10 = vld [vmem:[%s645_s0] sm:$0xff]  ;;  %v500_v12 = vld [vmem:[#allocation4] sm:$0xff]   ;;  %v501_v13 = vld [vmem:[#allocation4 + $0x8] sm:$0xff]   ;;  %vm159_vm1 = vcmask 1040384   ;;  %v568_v38 = vmov 0.0   ;;  %vm289_vm2 = vcmask 138240  }
  0x2b   :  { %v414_v11 = vcombine.high %v46_v10, %v46_v10  ;;  %297 = vmatpush1.bf16.msra.mxu1 %v500_v12  ;;  %v487_v15 = vld [vmem:[#allocation2 + $0x54] ss:$8 sps:$4 sm:$0xff]   ;;  %v489_v16 = vld [vmem:[#allocation2 + $0x50] ss:$8 sps:$4 sm:$0xff]   ;;  %v490_v17 = vld [vmem:[#allocation2 + $0x64] ss:$8 sps:$4 sm:$0xff]   ;;  %v413_v31 = vcombine.low %v46_v10, %v46_v10 }
  0x2c   :  { %171 = vmatpush1.bf16.msra.mxu0 %v477_v4  ;;  %298 = vmatprep.subr.bf16.mxu1 %v567_v0  ;;  %v502_v18 = vld [vmem:[#allocation4 + $0x10] sm:$0xff]   ;;  %v63_v19 = vld [vmem:[#allocation2 + $0x80] sm:$0x11]  ;;  %v161_v24 = vsel %vm159_vm1, 65535, %v567_v0  ;;  %v504_v25 = vld [vmem:[#allocation4 + $0x20] sm:$0xff]   ;;  %vm569_vm3 = vmmov 0  }
  0x2d   :  { %172 = vmatprep.subr.bf16.mxu0 %v478_v5  ;;  %433 = vmatprep.mubr.msk.bf16.mxu0 %vm155_vm0, %v414_v11  ;;  %v503_v20 = vld [vmem:[#allocation4 + $0x18] sm:$0xff]   ;;  %v493_v22 = vld [vmem:[#allocation2 + $0x74] ss:$8 sps:$4 sm:$0xff]   ;;  %v432_v23 = vcombine.high %v63_v19, %v63_v19  ;;  %v495_v26 = vld [vmem:[#allocation2 + $0x70] ss:$8 sps:$4 sm:$0xff]   ;;  %v431_v27 = vcombine.low %v63_v19, %v63_v19  ;;  %vm358_vm4 = vcmask 269312  }
  0x2e   :  { %v492_v21 = vld [vmem:[#allocation2 + $0x60] ss:$8 sps:$4 sm:$0xff]   ;;  %v505_v29 = vld [vmem:[#allocation4 + $0x28] sm:$0xff]   ;;  %v506_v32 = vld [vmem:[#allocation4 + $0x30] sm:$0xff]   ;;  %vm405_vm5 = vcmask 31744  }
  0x2f   :  { %299 = vmatpush1.bf16.msra.mxu1 %v501_v13  ;;  %v166_v28 = vand.u32 %v432_v23, %v161_v24  ;;  %v163_v30 = vand.u32 %v431_v27, %v161_v24  ;;  %v507_v33 = vld [vmem:[#allocation4 + $0x38] sm:$0xff]   ;;  %v508_v34 = vld [vmem:[#allocation4 + $0x40] sm:$0xff]   ;;  %v509_v35 = vld [vmem:[#allocation4 + $0x48] ss:$0 sps:$4 sm:$0x11]  }
  0x30   :  { %173 = vmatpush1.bf16.msra.mxu0 %v480_v6  ;;  %300 = vmatprep.subr.bf16.mxu1 %v567_v0  ;;  %v294_v36 = vand.u32 %v509_v35, %v161_v24  ;;  %v510_v37 = vld [vmem:[%s648_s3] sm:$0xff]   ;;  %v511_v39 = vld [vmem:[%s648_s3 + $0x8] sm:$0xff]   ;;  %v512_v48 = vld [vmem:[%s648_s3 + $0x10] ss:$0 sps:$4 sm:$0x11]  }
  0x31   :  { %174 = vmatprep.subr.bf16.mxu0 %v481_v7  ;;  %v363_v49 = vand.u32 %v512_v48, %v161_v24 }
  0x33   :  { %301 = vmatpush1.bf16.msra.mxu1 %v502_v18 }
  0x34   :  { %175 = vmatpush1.bf16.msra.mxu0 %v483_v8  ;;  %302 = vmatprep.subr.bf16.mxu1 %v567_v0 }
  0x35   :  { %176 = vmatprep.subr.bf16.mxu0 %v484_v9 }
  0x37   :  { %303 = vmatpush1.bf16.msra.mxu1 %v503_v20 }
  0x38   :  { %177 = vmatpush1.bf16.msra.mxu0 %v486_v14  ;;  %304 = vmatprep.subr.bf16.mxu1 %v567_v0 }
  0x39   :  { %178 = vmatprep.subr.bf16.mxu0 %v487_v15 }
  0x3b   :  { %305 = vmatpush1.bf16.msra.mxu1 %v504_v25 }
  0x3c   :  { %179 = vmatpush1.bf16.msra.mxu0 %v489_v16  ;;  %306 = vmatprep.subr.bf16.mxu1 %v567_v0 }
  0x3d   :  { %180 = vmatprep.subr.bf16.mxu0 %v490_v17 }
  0x3f   :  { %307 = vmatpush1.bf16.msra.mxu1 %v505_v29 }
  0x40   :  { %181 = vmatpush1.bf16.msra.mxu0 %v492_v21  ;;  %308 = vmatprep.subr.bf16.mxu1 %v567_v0 }
  0x41   :  { %182 = vmatprep.subr.bf16.mxu0 %v493_v22 }
  0x43   :  { %309 = vmatpush1.bf16.msra.mxu1 %v506_v32 }
  0x44   :  { %183 = vmatpush1.bf16.msra.mxu0 %v495_v26  ;;  %310 = vmatprep.subr.bf16.mxu1 %v567_v0 }
  0x45   :  { %184 = vmatprep.subr.bf16.mxu0 %v166_v28 }
  0x47   :  { %311 = vmatpush1.bf16.msra.mxu1 %v507_v33 }
  0x48   :  { %185 = vmatpush1.bf16.msra.mxu0 %v163_v30  ;;  %312 = vmatprep.subr.bf16.mxu1 %v567_v0 }
  0x49   :  { %453 = vmatprep.subr.bf16.mxu0 %v568_v38 }
  0x4b   :  { %201 = vmatmul.mubr.bf16.vlgmr.msra.gmra.mrb[0].mxu0 %v413_v31  ;;  %313 = vmatpush1.bf16.msra.mxu1 %v508_v34 }
  0x4c   :  { %314 = vmatprep.subr.bf16.mxu1 %v567_v0  ;;  %454 = vmatpush3.bf16.msra.mxu0 %v510_v37 }
  0x4d   :  { %455 = vmatprep.subr.bf16.mxu0 %v568_v38  ;;  %459 = vmatprep.mubr.msk.bf16.mxu0 %vm569_vm3, %v568_v38 }
  0x4f   :  { %315 = vmatpush1.bf16.msra.mxu1 %v294_v36 }
  0x50   :  { %456 = vmatpush3.bf16.msra.mxu0 %v511_v39 }
  0x51   :  { %457 = vmatprep.subr.bf16.mxu0 %v568_v38 }
  0x54   :  { %458 = vmatpush3.bf16.msra.mxu0 %v363_v49 }
 0x11e   :  { %v202_v40 = vpop.f32.mrb[0].mxu0 }
 0x11f   :  { %v209_v41 = vmax.f32 %v202_v40, 0.0  ;;  %v204_v42 = vpop.f32.mrb[1].mxu0 }
 0x120   :  { %v210_v43 = vmax.f32 %v204_v42, 0.0  ;;  %v206_v44 = vpop.f32.mrb[2].mxu0 }
 0x121   :  { %v207_v45 = vpop.f32.mrb[3].mxu0  ;;  %v211_v47 = vpack.c.bf16 %v209_v41, %v209_v41 }
 0x122   :  { %v212_v46 = vpack.c.bf16 %v210_v43, %v210_v43 }
 0x124   :  { %444 = vmatprep.mubr.msk.bf16.mxu1 %vm289_vm2, %v212_v46 }
 0x125   :  { %329 = vmatmul.mubr.bf16.vlgmr.msra.gmra.mrb[0].mxu1 %v211_v47 }
 0x1f8   :  { %v330_v50 = vpop.f32.mrb[0].mxu1 }
 0x1f9   :  { %v336_v51 = vmax.f32 %v330_v50, 0.0  ;;  %v332_v52 = vpop.f32.mrb[1].mxu1 }
 0x1fa   :  { %v333_v53 = vpop.f32.mrb[2].mxu1 }
 0x1fb   :  { %v337_v54 = vpack.c.bf16 %v336_v51, %v336_v51  ;;  %v334_v55 = vpop.f32.mrb[3].mxu1 }
 0x1fd   :  { %460 = vmatmul.mubr.msk.bf16.vlgmr.msra.gmra.mrb[4].mxu0 %vm358_vm4, %v337_v54 }
 0x2d0   :  { %v399_v56 = vpop.f32.mrb[4].mxu0 }
 0x2d1   :  { %406 = vst.msk [vmem:[%s649_s4] sm:$0xff] %vm405_vm5, %v399_v56  ;;  %v461_v57 = vpop.f32.mrb[5].mxu0 }
 0x2d2   :  { %v402_v58 = vpop.f32.mrb[6].mxu0 }
 0x2d3   :  { %v462_v59 = vpop.f32.mrb[7].mxu0 }
 0x2d4   :  { %411 = vsyncpa [#allocation3], 1 }
 0x2d5   :  { %412 = vsyncpa [#allocation5], 1 }

</bundles_post_ra>
